<compile_context>
chip_gen: v5e
topology: v5e:2x2
jax: 0.10.0
libtpu: 0.0.40
codegen_flags: <defaults>
</compile_context>

<pallas_src>
import functools

import jax
import jax.numpy as jnp
from jax.experimental import pallas as pl
from jax.experimental.pallas import tpu as pltpu


def _dis_partial_kernel(ys_ref, yt_ref, kl_ref, ss_ref, st_ref, dt_ref,
                        *, inv_T, inv_C):
    """Accumulate per-(batch-block) partials over the HW grid axis.

    kl_ref : (1, 8, 128)       running scalar KL partial sum
    ss_ref : (1, tile_n, 128)  running per-sample  sum_hw a_s**2
    st_ref : (1, tile_n, 128)  running per-sample  sum_hw a_t**2
    dt_ref : (1, tile_n, 128)  running per-sample  sum_hw a_s*a_t
    (T**2/N, 1/(N*HW) and the closed-form MSE finish happen in the wrapper.)
    """
    j = pl.program_id(1)

    @pl.when(j == 0)
    def _init():
        kl_ref[...] = jnp.zeros_like(kl_ref)
        ss_ref[...] = jnp.zeros_like(ss_ref)
        st_ref[...] = jnp.zeros_like(st_ref)
        dt_ref[...] = jnp.zeros_like(dt_ref)

    # ---- attention-map partial sums (short f32 live ranges) ----------------
    xs = ys_ref[...].astype(jnp.float32)                 # (tn, C, thw)
    a_s = jnp.sum(xs * xs, axis=1) * inv_C               # (tn, thw) = mean_c x^2
    xt = yt_ref[...].astype(jnp.float32)
    a_t = jnp.sum(xt * xt, axis=1) * inv_C

    ss_ref[...] += jnp.sum(a_s * a_s, axis=-1, keepdims=True)[None]
    st_ref[...] += jnp.sum(a_t * a_t, axis=-1, keepdims=True)[None]
    dt_ref[...] += jnp.sum(a_s * a_t, axis=-1, keepdims=True)[None]

    # ---- KL partial ---------------------------------------------------------
    # Re-read refs so the f32 copies above need not stay live through the KL
    # intermediates (s, t, e_t).  Softmax is shift invariant; shifting keeps
    # exp() in range.
    s = ys_ref[...].astype(jnp.float32) * inv_T
    s = s - jnp.max(s, axis=1, keepdims=True)
    t = yt_ref[...].astype(jnp.float32) * inv_T
    t = t - jnp.max(t, axis=1, keepdims=True)

    e_t = jnp.exp(t)                                              # EUP
    sum_e_s = jnp.sum(jnp.exp(s), axis=1, keepdims=True)          # (tn,1,thw)
    sum_e_t = jnp.sum(e_t, axis=1, keepdims=True)                 # (tn,1,thw)
    inner = jnp.sum(e_t * (t - s), axis=1, keepdims=True)         # (tn,1,thw)

    # sum_c p_t*(log p_t - (log_softmax(y_s/T)+1e-7))
    #   = inner/sum_e_t - (log sum_e_t - log sum_e_s + 1e-7)     [sum_c p_t = 1]
    kl_pos = inner * pl.reciprocal(sum_e_t) - (
        jnp.log(sum_e_t) - jnp.log(sum_e_s) + 1e-7)
    kl_ref[...] += jnp.sum(kl_pos)


def _choose_tiles(n, c, hw, itemsize, budget):
    """Pick (tile_n, hw_tile) so one input block ~fits the byte budget.

    hw_tile is either the full HW extent or a multiple of 128 dividing HW
    (so the (8,128) BlockSpec constraint holds with no padded remainder,
    which would otherwise bias KL by -1e-7 per padded position).
    """
    per_sample = c * hw * itemsize
    if per_sample <= budget:
        tile_n = 1
        for d in range(n, 0, -1):
            if n % d == 0 and d * per_sample <= budget:
                tile_n = d
                break
        return tile_n, hw
    # Per-sample block too big -> tile the HW (lane) axis, batch tile = 1.
    if hw % 128 == 0:
        hw_tile = 128
        for k in range(hw // 128, 0, -1):
            t = k * 128
            if hw % t == 0 and c * t * itemsize <= budget:
                hw_tile = t
                break
        return 1, hw_tile
    # TODO(synk): HW not a multiple of 128 -> must take the full extent
    # (block dim must equal the array dim); may exceed the budget for
    # pathological shapes.
    return 1, hw


def dis_loss(y_s, y_t, *, T, alpha, block_budget_bytes=None):
    """Forward pass of `Dis` (NCHW inputs, f32 or bf16; math is f32 inside)."""
    n, c, h, w = y_s.shape
    hw = h * w
    ys3 = y_s.reshape(n, c, hw)
    yt3 = y_t.reshape(n, c, hw)
    itemsize = jnp.dtype(y_s.dtype).itemsize

    # ---- generation-aware tile budget ---------------------------------------
    try:
        vmem_cap = int(pltpu.get_tpu_info().vmem_capacity_bytes)
    except Exception:  # pragma: no cover - emulator / older jax
        vmem_cap = 64 * 1024 * 1024
    if block_budget_bytes is None:
        # ~6.4 MiB/input-block on 128 MiB VMEM chips (v5e/v6e),
        # ~3.2 MiB on v7x (64 MiB), so 2 inputs x 2 pipeline buffers +
        # full-size f32 intermediates stay well inside physical VMEM.
        block_budget_bytes = max(vmem_cap // 20, 1 << 20)

    tile_n, hw_tile = _choose_tiles(n, c, hw, itemsize, block_budget_bytes)
    nb = n // tile_n
    hb = hw // hw_tile

    blk_in = tile_n * c * hw_tile * itemsize
    blk_f32 = tile_n * c * hw_tile * 4
    # 2 inputs x 2 double-buffers + ~8 full-size f32 intermediates + slack
    vmem_limit = 4 * blk_in + 8 * blk_f32 + (4 << 20)
    vmem_limit = max(vmem_limit, 32 * 1024 * 1024)
    vmem_limit = min(vmem_limit, int(vmem_cap * 0.95))

    kernel = functools.partial(
        _dis_partial_kernel, inv_T=float(1.0 / T), inv_C=float(1.0 / c))

    kl_p, ss_p, st_p, dt_p = pl.pallas_call(
        kernel,
        out_shape=(
            jax.ShapeDtypeStruct((nb, 8, 128), jnp.float32),
            jax.ShapeDtypeStruct((nb, tile_n, 128), jnp.float32),
            jax.ShapeDtypeStruct((nb, tile_n, 128), jnp.float32),
            jax.ShapeDtypeStruct((nb, tile_n, 128), jnp.float32),
        ),
        grid=(nb, hb),
        in_specs=[
            pl.BlockSpec((tile_n, c, hw_tile), lambda i, j: (i, 0, j)),
            pl.BlockSpec((tile_n, c, hw_tile), lambda i, j: (i, 0, j)),
        ],
        out_specs=(
            pl.BlockSpec((1, 8, 128), lambda i, j: (i, 0, 0)),
            pl.BlockSpec((1, tile_n, 128), lambda i, j: (i, 0, 0)),
            pl.BlockSpec((1, tile_n, 128), lambda i, j: (i, 0, 0)),
            pl.BlockSpec((1, tile_n, 128), lambda i, j: (i, 0, 0)),
        ),
        compiler_params=pltpu.CompilerParams(
            # batch axis parallel (2-TC sharding on v7x), HW reduction axis last
            dimension_semantics=("parallel", "arbitrary"),
            vmem_limit_bytes=int(vmem_limit),
        ),
    )(ys3, yt3)

    # ---- tiny final reductions / normalizations in the wrapper --------------
    kl = jnp.sum(kl_p[:, 0, 0]) * (float(T) ** 2) / n

    ss = ss_p[:, :, 0].reshape(n)
    st = st_p[:, :, 0].reshape(n)
    dt = dt_p[:, :, 0].reshape(n)
    # || a_s/||a_s|| - a_t/||a_t|| ||^2 = 2 - 2 * <a_s,a_t> / (||a_s|| ||a_t||)
    cos = dt * jax.lax.rsqrt(jnp.maximum(ss * st, 1e-40))
    mse = jnp.sum(2.0 - 2.0 * cos) / (n * hw)

    # glue (matches: self.alpha = tensor([alpha, 1-alpha]);
    #       loss = alpha_vec*kl + (1-alpha_vec)*mse; loss.mean())
    alpha_vec = jnp.array([alpha, 1.0 - alpha], dtype=jnp.float32)
    loss_vec = alpha_vec * kl + (1.0 - alpha_vec) * mse
    return jnp.mean(loss_vec)


def _dis_loss_ref(y_s, y_t, *, T, alpha):
    """Pure-JAX reference (same assumed self_attention_map semantics)."""
    n, c, h, w = y_s.shape
    ys = y_s.reshape(n, c, h * w).astype(jnp.float32)
    yt = y_t.reshape(n, c, h * w).astype(jnp.float32)
    p_s = jax.nn.log_softmax(ys / T, axis=1) + 1e-7
    log_p_t = jax.nn.log_softmax(yt / T, axis=1)
    p_t = jnp.exp(log_p_t)
    kl = jnp.sum(p_t * (log_p_t - p_s)) * (T ** 2) / n

    def att_map(x):
        a = jnp.mean(x * x, axis=1)
        nrm = jnp.sqrt(jnp.sum(a * a, axis=-1, keepdims=True))
        return a / jnp.maximum(nrm, 1e-12)

    mse = jnp.mean((att_map(ys) - att_map(yt)) ** 2)
    alpha_vec = jnp.array([alpha, 1.0 - alpha], dtype=jnp.float32)
    return jnp.mean(alpha_vec * kl + (1.0 - alpha_vec) * mse)


if __name__ == "__main__":
    # deterministic small inputs consistent with the module (NCHW)
    key = jax.random.PRNGKey(0)
    k1, k2 = jax.random.split(key)
    y_s = jax.random.normal(k1, (2, 8, 16, 16), dtype=jnp.float32)
    y_t = jax.random.normal(k2, (2, 8, 16, 16), dtype=jnp.float32)

    T = 4.0
    alpha = 0.7

    ref = _dis_loss_ref(y_s, y_t, T=T, alpha=alpha)

    # default (generation-aware) tiling
    loss = dis_loss(y_s, y_t, T=T, alpha=alpha)
    jax.block_until_ready(loss)

    # force the batch- and HW-tiled accumulation path (tile_n=1, hw_tile=128)
    loss_tiled = dis_loss(y_s, y_t, T=T, alpha=alpha, block_budget_bytes=1)
    jax.block_until_ready(loss_tiled)

    # bf16 inputs (halves HBM traffic on v5e); in-kernel math stays f32
    ys_bf = y_s.astype(jnp.bfloat16)
    yt_bf = y_t.astype(jnp.bfloat16)
    loss_bf16 = dis_loss(ys_bf, yt_bf, T=T, alpha=alpha)
    ref_bf16 = _dis_loss_ref(ys_bf.astype(jnp.float32),
                             yt_bf.astype(jnp.float32), T=T, alpha=alpha)
    jax.block_until_ready(loss_bf16)

    assert loss.shape == () and bool(jnp.isfinite(loss))
    assert jnp.allclose(loss, ref, rtol=1e-4, atol=1e-5), (loss, ref)
    assert jnp.allclose(loss_tiled, ref, rtol=1e-4, atol=1e-5), (loss_tiled, ref)
    assert jnp.allclose(loss_bf16, ref_bf16, rtol=1e-3, atol=1e-4), (loss_bf16, ref_bf16)
    print("KERNEL_OK")
</pallas_src>

<mosaic_0001>
module attributes {stable_mosaic.version = 11 : i64} {
  func.func @_dis_partial_kernel(%arg0: i32, %arg1: i32, %arg2: memref<2x8x256xf32, #tpu.memory_space<vmem>>, %arg3: memref<2x8x256xf32, #tpu.memory_space<vmem>>, %arg4: memref<1x8x128xf32, #tpu.memory_space<vmem>>, %arg5: memref<1x2x128xf32, #tpu.memory_space<vmem>>, %arg6: memref<1x2x128xf32, #tpu.memory_space<vmem>>, %arg7: memref<1x2x128xf32, #tpu.memory_space<vmem>>) attributes {dimension_semantics = [#tpu.dimension_semantics<parallel>, #tpu.dimension_semantics<arbitrary>], iteration_bounds = array<i64: 1, 1>, scalar_prefetch = 0 : i64, scratch_operands = 0 : i64, tpu.core_type = #tpu.core_type<tc>, window_params = [{transform_indices = @transform_0, window_bounds = array<i64: 2, 8, 256>}, {transform_indices = @transform_1, window_bounds = array<i64: 2, 8, 256>}, {transform_indices = @transform_2, window_bounds = array<i64: 1, 8, 128>}, {transform_indices = @transform_3, window_bounds = array<i64: 1, 2, 128>}, {transform_indices = @transform_4, window_bounds = array<i64: 1, 2, 128>}, {transform_indices = @transform_5, window_bounds = array<i64: 1, 2, 128>}]} {
    %c0_i32 = arith.constant 0 : i32
    %0 = arith.cmpi eq, %arg1, %c0_i32 : i32
    %1 = arith.extui %0 : i1 to i32
    %c0_i32_0 = arith.constant 0 : i32
    %2 = arith.cmpi ne, %1, %c0_i32_0 : i32
    scf.if %2 {
      %cst_51 = arith.constant 0.000000e+00 : f32
      %77 = vector.broadcast %cst_51 : f32 to vector<1x8x128xf32>
      %c0_52 = arith.constant 0 : index
      %c0_53 = arith.constant 0 : index
      %c0_54 = arith.constant 0 : index
      %78 = vector.load %arg4[%c0_52, %c0_53, %c0_54] : memref<1x8x128xf32, #tpu.memory_space<vmem>>, vector<1x8x128xf32>
      tpu.vector_store %arg4[%c0_52, %c0_53, %c0_54], %77 {strides = array<i32>} : memref<1x8x128xf32, #tpu.memory_space<vmem>>, vector<1x8x128xf32>,
      %cst_55 = arith.constant 0.000000e+00 : f32
      %79 = vector.broadcast %cst_55 : f32 to vector<1x2x128xf32>
      %c0_56 = arith.constant 0 : index
      %c0_57 = arith.constant 0 : index
      %c0_58 = arith.constant 0 : index
      %80 = vector.load %arg5[%c0_56, %c0_57, %c0_58] : memref<1x2x128xf32, #tpu.memory_space<vmem>>, vector<1x2x128xf32>
      tpu.vector_store %arg5[%c0_56, %c0_57, %c0_58], %79 {strides = array<i32>} : memref<1x2x128xf32, #tpu.memory_space<vmem>>, vector<1x2x128xf32>,
      %cst_59 = arith.constant 0.000000e+00 : f32
      %81 = vector.broadcast %cst_59 : f32 to vector<1x2x128xf32>
      %c0_60 = arith.constant 0 : index
      %c0_61 = arith.constant 0 : index
      %c0_62 = arith.constant 0 : index
      %82 = vector.load %arg6[%c0_60, %c0_61, %c0_62] : memref<1x2x128xf32, #tpu.memory_space<vmem>>, vector<1x2x128xf32>
      tpu.vector_store %arg6[%c0_60, %c0_61, %c0_62], %81 {strides = array<i32>} : memref<1x2x128xf32, #tpu.memory_space<vmem>>, vector<1x2x128xf32>,
      %cst_63 = arith.constant 0.000000e+00 : f32
      %83 = vector.broadcast %cst_63 : f32 to vector<1x2x128xf32>
      %c0_64 = arith.constant 0 : index
      %c0_65 = arith.constant 0 : index
      %c0_66 = arith.constant 0 : index
      %84 = vector.load %arg7[%c0_64, %c0_65, %c0_66] : memref<1x2x128xf32, #tpu.memory_space<vmem>>, vector<1x2x128xf32>
      tpu.vector_store %arg7[%c0_64, %c0_65, %c0_66], %83 {strides = array<i32>} : memref<1x2x128xf32, #tpu.memory_space<vmem>>, vector<1x2x128xf32>,
    } else {
    }
    %c0 = arith.constant 0 : index
    %c0_1 = arith.constant 0 : index
    %c0_2 = arith.constant 0 : index
    %3 = vector.load %arg2[%c0, %c0_1, %c0_2] : memref<2x8x256xf32, #tpu.memory_space<vmem>>, vector<2x8x256xf32>
    %4 = arith.mulf %3, %3 : vector<2x8x256xf32>
    %cst = arith.constant dense<0.000000e+00> : vector<2x256xf32>
    %5 = vector.multi_reduction <add>, %4, %cst [1] : vector<2x8x256xf32> to vector<2x256xf32>
    %cst_3 = arith.constant 1.250000e-01 : f32
    %6 = vector.broadcast %cst_3 : f32 to vector<2x256xf32>
    %7 = arith.mulf %5, %6 : vector<2x256xf32>
    %c0_4 = arith.constant 0 : index
    %c0_5 = arith.constant 0 : index
    %c0_6 = arith.constant 0 : index
    %8 = vector.load %arg3[%c0_4, %c0_5, %c0_6] : memref<2x8x256xf32, #tpu.memory_space<vmem>>, vector<2x8x256xf32>
    %9 = arith.mulf %8, %8 : vector<2x8x256xf32>
    %cst_7 = arith.constant dense<0.000000e+00> : vector<2x256xf32>
    %10 = vector.multi_reduction <add>, %9, %cst_7 [1] : vector<2x8x256xf32> to vector<2x256xf32>
    %cst_8 = arith.constant 1.250000e-01 : f32
    %11 = vector.broadcast %cst_8 : f32 to vector<2x256xf32>
    %12 = arith.mulf %10, %11 : vector<2x256xf32>
    %c0_9 = arith.constant 0 : index
    %c0_10 = arith.constant 0 : index
    %c0_11 = arith.constant 0 : index
    %13 = vector.load %arg5[%c0_9, %c0_10, %c0_11] : memref<1x2x128xf32, #tpu.memory_space<vmem>>, vector<1x2x128xf32>
    %14 = arith.mulf %7, %7 : vector<2x256xf32>
    %cst_12 = arith.constant dense<0.000000e+00> : vector<2xf32>
    %15 = vector.multi_reduction <add>, %14, %cst_12 [1] : vector<2x256xf32> to vector<2xf32>
    %16 = vector.shape_cast %15 : vector<2xf32> to vector<2x1xf32>
    %17 = vector.shape_cast %16 : vector<2x1xf32> to vector<1x2x1xf32>
    %18 = vector.broadcast %17 : vector<1x2x1xf32> to vector<1x2x128xf32>
    %19 = arith.addf %13, %18 : vector<1x2x128xf32>
    %c0_13 = arith.constant 0 : index
    %c0_14 = arith.constant 0 : index
    %c0_15 = arith.constant 0 : index
    %20 = vector.load %arg5[%c0_13, %c0_14, %c0_15] : memref<1x2x128xf32, #tpu.memory_space<vmem>>, vector<1x2x128xf32>
    tpu.vector_store %arg5[%c0_13, %c0_14, %c0_15], %19 {strides = array<i32>} : memref<1x2x128xf32, #tpu.memory_space<vmem>>, vector<1x2x128xf32>,
    %c0_16 = arith.constant 0 : index
    %c0_17 = arith.constant 0 : index
    %c0_18 = arith.constant 0 : index
    %21 = vector.load %arg6[%c0_16, %c0_17, %c0_18] : memref<1x2x128xf32, #tpu.memory_space<vmem>>, vector<1x2x128xf32>
    %22 = arith.mulf %12, %12 : vector<2x256xf32>
    %cst_19 = arith.constant dense<0.000000e+00> : vector<2xf32>
    %23 = vector.multi_reduction <add>, %22, %cst_19 [1] : vector<2x256xf32> to vector<2xf32>
    %24 = vector.shape_cast %23 : vector<2xf32> to vector<2x1xf32>
    %25 = vector.shape_cast %24 : vector<2x1xf32> to vector<1x2x1xf32>
    %26 = vector.broadcast %25 : vector<1x2x1xf32> to vector<1x2x128xf32>
    %27 = arith.addf %21, %26 : vector<1x2x128xf32>
    %c0_20 = arith.constant 0 : index
    %c0_21 = arith.constant 0 : index
    %c0_22 = arith.constant 0 : index
    %28 = vector.load %arg6[%c0_20, %c0_21, %c0_22] : memref<1x2x128xf32, #tpu.memory_space<vmem>>, vector<1x2x128xf32>
    tpu.vector_store %arg6[%c0_20, %c0_21, %c0_22], %27 {strides = array<i32>} : memref<1x2x128xf32, #tpu.memory_space<vmem>>, vector<1x2x128xf32>,
    %c0_23 = arith.constant 0 : index
    %c0_24 = arith.constant 0 : index
    %c0_25 = arith.constant 0 : index
    %29 = vector.load %arg7[%c0_23, %c0_24, %c0_25] : memref<1x2x128xf32, #tpu.memory_space<vmem>>, vector<1x2x128xf32>
    %30 = arith.mulf %7, %12 : vector<2x256xf32>
    %cst_26 = arith.constant dense<0.000000e+00> : vector<2xf32>
    %31 = vector.multi_reduction <add>, %30, %cst_26 [1] : vector<2x256xf32> to vector<2xf32>
    %32 = vector.shape_cast %31 : vector<2xf32> to vector<2x1xf32>
    %33 = vector.shape_cast %32 : vector<2x1xf32> to vector<1x2x1xf32>
    %34 = vector.broadcast %33 : vector<1x2x1xf32> to vector<1x2x128xf32>
    %35 = arith.addf %29, %34 : vector<1x2x128xf32>
    %c0_27 = arith.constant 0 : index
    %c0_28 = arith.constant 0 : index
    %c0_29 = arith.constant 0 : index
    %36 = vector.load %arg7[%c0_27, %c0_28, %c0_29] : memref<1x2x128xf32, #tpu.memory_space<vmem>>, vector<1x2x128xf32>
    tpu.vector_store %arg7[%c0_27, %c0_28, %c0_29], %35 {strides = array<i32>} : memref<1x2x128xf32, #tpu.memory_space<vmem>>, vector<1x2x128xf32>,
    %c0_30 = arith.constant 0 : index
    %c0_31 = arith.constant 0 : index
    %c0_32 = arith.constant 0 : index
    %37 = vector.load %arg2[%c0_30, %c0_31, %c0_32] : memref<2x8x256xf32, #tpu.memory_space<vmem>>, vector<2x8x256xf32>
    %cst_33 = arith.constant 2.500000e-01 : f32
    %38 = vector.broadcast %cst_33 : f32 to vector<2x8x256xf32>
    %39 = arith.mulf %37, %38 : vector<2x8x256xf32>
    %cst_34 = arith.constant dense<0xFF800000> : vector<2x256xf32>
    %40 = vector.multi_reduction <maximumf>, %39, %cst_34 [1] : vector<2x8x256xf32> to vector<2x256xf32>
    %41 = vector.shape_cast %40 : vector<2x256xf32> to vector<2x1x256xf32>
    %42 = vector.broadcast %41 : vector<2x1x256xf32> to vector<2x8x256xf32>
    %43 = arith.subf %39, %42 : vector<2x8x256xf32>
    %c0_35 = arith.constant 0 : index
    %c0_36 = arith.constant 0 : index
    %c0_37 = arith.constant 0 : index
    %44 = vector.load %arg3[%c0_35, %c0_36, %c0_37] : memref<2x8x256xf32, #tpu.memory_space<vmem>>, vector<2x8x256xf32>
    %cst_38 = arith.constant 2.500000e-01 : f32
    %45 = vector.broadcast %cst_38 : f32 to vector<2x8x256xf32>
    %46 = arith.mulf %44, %45 : vector<2x8x256xf32>
    %cst_39 = arith.constant dense<0xFF800000> : vector<2x256xf32>
    %47 = vector.multi_reduction <maximumf>, %46, %cst_39 [1] : vector<2x8x256xf32> to vector<2x256xf32>
    %48 = vector.shape_cast %47 : vector<2x256xf32> to vector<2x1x256xf32>
    %49 = vector.broadcast %48 : vector<2x1x256xf32> to vector<2x8x256xf32>
    %50 = arith.subf %46, %49 : vector<2x8x256xf32>
    %51 = math.exp %50 : vector<2x8x256xf32>
    %52 = math.exp %43 : vector<2x8x256xf32>
    %cst_40 = arith.constant dense<0.000000e+00> : vector<2x256xf32>
    %53 = vector.multi_reduction <add>, %52, %cst_40 [1] : vector<2x8x256xf32> to vector<2x256xf32>
    %54 = vector.shape_cast %53 : vector<2x256xf32> to vector<2x1x256xf32>
    %cst_41 = arith.constant dense<0.000000e+00> : vector<2x256xf32>
    %55 = vector.multi_reduction <add>, %51, %cst_41 [1] : vector<2x8x256xf32> to vector<2x256xf32>
    %56 = vector.shape_cast %55 : vector<2x256xf32> to vector<2x1x256xf32>
    %57 = arith.subf %50, %43 : vector<2x8x256xf32>
    %58 = arith.mulf %51, %57 : vector<2x8x256xf32>
    %cst_42 = arith.constant dense<0.000000e+00> : vector<2x256xf32>
    %59 = vector.multi_reduction <add>, %58, %cst_42 [1] : vector<2x8x256xf32> to vector<2x256xf32>
    %60 = vector.shape_cast %59 : vector<2x256xf32> to vector<2x1x256xf32>
    %61 = tpu.reciprocal %56 : vector<2x1x256xf32> -> vector<2x1x256xf32>
    %62 = arith.mulf %60, %61 : vector<2x1x256xf32>
    %63 = math.log %56 : vector<2x1x256xf32>
    %64 = math.log %54 : vector<2x1x256xf32>
    %65 = arith.subf %63, %64 : vector<2x1x256xf32>
    %cst_43 = arith.constant 1.000000e-07 : f32
    %66 = vector.broadcast %cst_43 : f32 to vector<2x1x256xf32>
    %67 = arith.addf %65, %66 : vector<2x1x256xf32>
    %68 = arith.subf %62, %67 : vector<2x1x256xf32>
    %c0_44 = arith.constant 0 : index
    %c0_45 = arith.constant 0 : index
    %c0_46 = arith.constant 0 : index
    %69 = vector.load %arg4[%c0_44, %c0_45, %c0_46] : memref<1x8x128xf32, #tpu.memory_space<vmem>>, vector<1x8x128xf32>
    %70 = vector.shape_cast %68 : vector<2x1x256xf32> to vector<1x2x1x256xf32>
    %cst_47 = arith.constant dense<0.000000e+00> : vector<1xf32>
    %71 = vector.multi_reduction <add>, %70, %cst_47 [1, 2, 3] : vector<1x2x1x256xf32> to vector<1xf32>
    %72 = vector.shape_cast %71 : vector<1xf32> to vector<1x1x1x1xf32>
    %73 = vector.extract %72[0, 0, 0, 0] : f32 from vector<1x1x1x1xf32>
    %74 = vector.broadcast %73 : f32 to vector<1x8x128xf32>
    %75 = arith.addf %69, %74 : vector<1x8x128xf32>
    %c0_48 = arith.constant 0 : index
    %c0_49 = arith.constant 0 : index
    %c0_50 = arith.constant 0 : index
    %76 = vector.load %arg4[%c0_48, %c0_49, %c0_50] : memref<1x8x128xf32, #tpu.memory_space<vmem>>, vector<1x8x128xf32>
    tpu.vector_store %arg4[%c0_48, %c0_49, %c0_50], %75 {strides = array<i32>} : memref<1x8x128xf32, #tpu.memory_space<vmem>>, vector<1x8x128xf32>,
    return
  }
  func.func @transform_0(%arg0: i32, %arg1: i32) -> (i32, i32, i32) {
    %c0_i32 = arith.constant 0 : i32
    %c0_i32_0 = arith.constant 0 : i32
    return %arg0, %c0_i32, %arg1 : i32, i32, i32
  }
  func.func @transform_1(%arg0: i32, %arg1: i32) -> (i32, i32, i32) {
    %c0_i32 = arith.constant 0 : i32
    %c0_i32_0 = arith.constant 0 : i32
    return %arg0, %c0_i32, %arg1 : i32, i32, i32
  }
  func.func @transform_2(%arg0: i32, %arg1: i32) -> (i32, i32, i32) {
    %c0_i32 = arith.constant 0 : i32
    %c0_i32_0 = arith.constant 0 : i32
    %c0_i32_1 = arith.constant 0 : i32
    return %arg0, %c0_i32, %c0_i32_0 : i32, i32, i32
  }
  func.func @transform_3(%arg0: i32, %arg1: i32) -> (i32, i32, i32) {
    %c0_i32 = arith.constant 0 : i32
    %c0_i32_0 = arith.constant 0 : i32
    %c0_i32_1 = arith.constant 0 : i32
    return %arg0, %c0_i32, %c0_i32_0 : i32, i32, i32
  }
  func.func @transform_4(%arg0: i32, %arg1: i32) -> (i32, i32, i32) {
    %c0_i32 = arith.constant 0 : i32
    %c0_i32_0 = arith.constant 0 : i32
    %c0_i32_1 = arith.constant 0 : i32
    return %arg0, %c0_i32, %c0_i32_0 : i32, i32, i32
  }
  func.func @transform_5(%arg0: i32, %arg1: i32) -> (i32, i32, i32) {
    %c0_i32 = arith.constant 0 : i32
    %c0_i32_0 = arith.constant 0 : i32
    %c0_i32_1 = arith.constant 0 : i32
    return %arg0, %c0_i32, %c0_i32_0 : i32, i32, i32
  }
}

</mosaic_0001>

<bundles_post_ra>
// kernel: tpu_custom_call.1
= control target key start
LH: loop header
LB: loop body
LE: loop exit
PB: predicated region body
PF: predicated region fallthrough
CT: control target
= control target key end

     0   :  { %11 = vsyncpa [#allocation3], 0  ;;  %s987_s0 = inlined_call_operand.hbm [shape: f32[2,8,256], index: 0, kind: input, shape index: {}]   ;;  %s988_s1 = inlined_call_operand.hbm [shape: f32[2,8,256], index: 1, kind: input, shape index: {}]   ;;  %s989_s2 = inlined_call_operand.hbm [shape: f32[1,8,128], index: 2, kind: output, shape index: {0}]   ;;  %s990_s3 = inlined_call_operand.hbm [shape: f32[1,2,128], index: 3, kind: output, shape index: {1}]   ;;  %s991_s4 = inlined_call_operand.hbm [shape: f32[1,2,128], index: 4, kind: output, shape index: {2}]   ;;  %s992_s5 = inlined_call_operand.hbm [shape: f32[1,2,128], index: 5, kind: output, shape index: {3}]  }
   0x1   :  { %12 = vsyncpa [#allocation6], 0 }
   0x2   :  { %13 = vsyncpa [#allocation4], 0 }
   0x3   :  { %14 = vsyncpa [#allocation9], 0 }
   0x4   :  { %15 = vsyncpa [#allocation12], 0  ;;  %s20_s20 = sshll.u32 %s987_s0, 4  ;;  %s739_s21 = smov [#allocation2]   ;;  %s21_s20 = int_to_ptr.hbm [resolvable:$true] %s20_s20 }
   0x5   :  { %s22_s22 = sshll.u32 %s739_s21, 4  ;;  %s33_s25 = sshll.u32 %s988_s1, 4  ;;  %s23_s22 = int_to_ptr.vmem [resolvable:$true] %s22_s22  ;;  %s34_s25 = int_to_ptr.hbm [resolvable:$true] %s33_s25 }
   0x6   :  { %s740_s26 = smov 256   ;;  %s741_s27 = smov 16  }
   0x7   :  { %28 = dma.hbm_to_vmem [thread:$0]  %s21_s20, 512, %s23_s22, [#allocation3], %s740_s26, %s740_s26, %s741_s27  }
   0x8   :  { %s742_s28 = smov [#allocation5]  }
   0x9   :  { %s35_s29 = sshll.u32 %s742_s28, 4  ;;  %s36_s29 = int_to_ptr.vmem [resolvable:$true] %s35_s29 }
   0xa   :  { %41 = dma.hbm_to_vmem [thread:$0]  %s34_s25, 512, %s36_s29, [#allocation6], %s740_s26, %s740_s26, %s741_s27  }
   0xb   :  { %729 = dma.done.wait [#allocation3], 512  }
   0xc   :  { %730 = vsyncadd [#allocation3], 4294966784 }
   0xd   :  { %731 = dma.done.wait [#allocation6], 512  }
   0xe   :  { %732 = vsyncadd [#allocation6], 4294966784  ;;  %v784_v0 = vld [vmem:[#allocation2] sm:$0xff]  ;;  %v786_v1 = vld [vmem:[#allocation2 + $0x8] sm:$0xff]  ;;  %s744_s0 = smov [#allocation8]   ;;  %s487_s7 = sshll.u32 %s990_s3, 4  ;;  %s488_s7 = int_to_ptr.hbm [resolvable:$true] %s487_s7 }
   0xf   :  { %v788_v2 = vld [vmem:[#allocation2 + $0x10] sm:$0xff]  ;;  %v790_v3 = vld [vmem:[#allocation2 + $0x18] sm:$0xff]  ;;  %v196_v4 = vmul.f32 0.25, %v784_v0  ;;  %v197_v5 = vmul.f32 0.25, %v786_v1  ;;  %v795_v7 = vld [vmem:[#allocation5] sm:$0xff]  ;;  %s485_s1 = sshll.u32 %s744_s0, 4  ;;  %s486_s1 = int_to_ptr.vmem [resolvable:$true] %s485_s1 }
  0x10   :  { %v198_v6 = vmul.f32 0.25, %v788_v2  ;;  %v797_v8 = vld [vmem:[#allocation5 + $0x8] sm:$0xff]  ;;  %v199_v9 = vmul.f32 0.25, %v790_v3  ;;  %v800_v10 = vld [vmem:[#allocation5 + $0x10] sm:$0xff]  ;;  %v802_v11 = vld [vmem:[#allocation5 + $0x18] sm:$0xff]  ;;  %v232_v12 = vmul.f32 0.25, %v795_v7 }
  0x11   :  { %v233_v13 = vmul.f32 0.25, %v797_v8  ;;  %v200_v14 = vrot.slane %v196_v4, 4  ;;  %v206_v15 = vrot.slane %v197_v5, 4  ;;  %v234_v17 = vmul.f32 0.25, %v800_v10  ;;  %s745_s8 = smov [#allocation10]   ;;  %s498_s12 = sshll.u32 %s991_s4, 4  ;;  %s499_s12 = int_to_ptr.hbm [resolvable:$true] %s498_s12 }
  0x12   :  { %v212_v16 = vrot.slane %v198_v6, 4  ;;  %v218_v18 = vrot.slane %v199_v9, 4  ;;  %v235_v19 = vmul.f32 0.25, %v802_v11  ;;  %v236_v20 = vrot.slane %v232_v12, 4  ;;  %s496_s9 = sshll.u32 %s745_s8, 4  ;;  %s746_s13 = smov [#allocation11]   ;;  %s497_s9 = int_to_ptr.vmem [resolvable:$true] %s496_s9 }
  0x13   :  { %v242_v21 = vrot.slane %v233_v13, 4  ;;  %v201_v22 = vmax.f32 %v196_v4, %v200_v14  ;;  %v207_v23 = vmax.f32 %v197_v5, %v206_v15  ;;  %v248_v25 = vrot.slane %v234_v17, 4  ;;  %s507_s14 = sshll.u32 %s746_s13, 4  ;;  %s509_s17 = sshll.u32 %s992_s5, 4  ;;  %s508_s14 = int_to_ptr.vmem [resolvable:$true] %s507_s14  ;;  %s510_s17 = int_to_ptr.hbm [resolvable:$true] %s509_s17 }
  0x14   :  { %v213_v24 = vmax.f32 %v198_v6, %v212_v16  ;;  %v219_v26 = vmax.f32 %v199_v9, %v218_v18  ;;  %v237_v27 = vmax.f32 %v232_v12, %v236_v20  ;;  %v254_v29 = vrot.slane %v235_v19, 4  ;;  %s747_s3 = smov [#allocation7]   ;;  %s476_s5 = sshll.u32 %s989_s2, 4  ;;  %s477_s5 = int_to_ptr.hbm [resolvable:$true] %s476_s5 }
  0x15   :  { %v243_v28 = vmax.f32 %v233_v13, %v242_v21  ;;  %v202_v30 = vrot.slane %v201_v22, 2  ;;  %v208_v31 = vrot.slane %v207_v23, 2  ;;  %v249_v33 = vmax.f32 %v234_v17, %v248_v25  ;;  %s474_s4 = sshll.u32 %s747_s3, 4  ;;  %s475_s4 = int_to_ptr.vmem [resolvable:$true] %s474_s4 }
  0x16   :  { %v214_v32 = vrot.slane %v213_v24, 2  ;;  %v220_v34 = vrot.slane %v219_v26, 2  ;;  %v238_v35 = vrot.slane %v237_v27, 2  ;;  %v255_v37 = vmax.f32 %v235_v19, %v254_v29 }
  0x17   :  { %v244_v36 = vrot.slane %v243_v28, 2  ;;  %v203_v38 = vmax.f32 %v201_v22, %v202_v30  ;;  %v209_v39 = vmax.f32 %v207_v23, %v208_v31  ;;  %v250_v41 = vrot.slane %v249_v33, 2 }
  0x18   :  { %v215_v40 = vmax.f32 %v213_v24, %v214_v32  ;;  %v221_v42 = vmax.f32 %v219_v26, %v220_v34  ;;  %v239_v43 = vmax.f32 %v237_v27, %v238_v35  ;;  %v256_v45 = vrot.slane %v255_v37, 2 }
  0x19   :  { %v245_v44 = vmax.f32 %v243_v28, %v244_v36  ;;  %v204_v46 = vrot.slane %v203_v38, 1  ;;  %v210_v47 = vrot.slane %v209_v39, 1  ;;  %v251_v49 = vmax.f32 %v249_v33, %v250_v41 }
  0x1a   :  { %v216_v48 = vrot.slane %v215_v40, 1  ;;  %v222_v50 = vrot.slane %v221_v42, 1  ;;  %v240_v51 = vrot.slane %v239_v43, 1  ;;  %v257_v53 = vmax.f32 %v255_v37, %v256_v45 }
  0x1b   :  { %v246_v52 = vrot.slane %v245_v44, 1  ;;  %v205_v54 = vmax.f32 %v203_v38, %v204_v46  ;;  %v211_v55 = vmax.f32 %v209_v39, %v210_v47  ;;  %v252_v57 = vrot.slane %v251_v49, 1 }
  0x1c   :  { %v217_v56 = vmax.f32 %v215_v40, %v216_v48  ;;  %v223_v58 = vmax.f32 %v221_v42, %v222_v50  ;;  %v241_v59 = vmax.f32 %v239_v43, %v240_v51  ;;  %v258_v61 = vrot.slane %v257_v53, 1 }
  0x1d   :  { %v247_v60 = vmax.f32 %v245_v44, %v246_v52  ;;  %v224_v62 = vsub.f32 %v196_v4, %v205_v54  ;;  %v253_v63 = vmax.f32 %v251_v49, %v252_v57  ;;  %v225_v14 = vsub.f32 %v197_v5, %v211_v55 }
  0x1e   :  { %v259_v15 = vmax.f32 %v257_v53, %v258_v61  ;;  %v260_v16 = vsub.f32 %v232_v12, %v241_v59  ;;  %v808_v20 = vsub.f32 %v198_v6, %v217_v56  ;;  %v812_v23 = vsub.f32 %v199_v9, %v223_v58 }
  0x1f   :  { %v261_v18 = vsub.f32 %v233_v13, %v247_v60  ;;  %v810_v21 = vsub.f32 %v234_v17, %v253_v63  ;;  %v272_v22 = vmul.f32 1.442695, %v224_v62  ;;  %v274_v5 = vmul.f32 1.442695, %v225_v14 }
  0x20   :  { %v814_v24 = vsub.f32 %v235_v19, %v259_v15  ;;  %v264_v25 = vmul.f32 1.442695, %v260_v16  ;;  %v276_v6 = vmul.f32 1.442695, %v808_v20  ;;  %v278_v12 = vmul.f32 1.442695, %v812_v23 }
  0x21   :  { %v266_v26 = vmul.f32 1.442695, %v261_v18  ;;  %v268_v27 = vmul.f32 1.442695, %v810_v21  ;;  %545 = vpow2.f32 %v272_v22  ;;  %v328_v9 = vsub.f32 %v260_v16, %v224_v62 }
  0x22   :  { %547 = vpow2.f32 %v264_v25  ;;  %v270_v4 = vmul.f32 1.442695, %v814_v24  ;;  %v329_v30 = vsub.f32 %v261_v18, %v225_v14  ;;  %v330_v38 = vsub.f32 %v810_v21, %v808_v20 }
  0x23   :  { %549 = vpow2.f32 %v266_v26  ;;  %v331_v39 = vsub.f32 %v814_v24, %v812_v23 }
  0x24   :  { %551 = vpow2.f32 %v268_v27 }
  0x25   :  { %553 = vpow2.f32 %v270_v4 }
  0x26   :  { %555 = vpow2.f32 %v274_v5 }
  0x27   :  { %v546_v13 = vpop.eup %545  ;;  %557 = vpow2.f32 %v276_v6 }
  0x28   :  { %v548_v17 = vpop.eup %547  ;;  %559 = vpow2.f32 %v278_v12  ;;  %v280_v19 = vrot.slane %v546_v13, 4 }
  0x29   :  { %v550_v28 = vpop.eup %549  ;;  %v304_v29 = vrot.slane %v548_v17, 4  ;;  %v332_v31 = vmul.f32 %v548_v17, %v328_v9 }
  0x2a   :  { %v552_v32 = vpop.eup %551  ;;  %v281_v33 = vadd.f32 %v546_v13, %v280_v19  ;;  %v310_v34 = vrot.slane %v550_v28, 4  ;;  %v333_v49 = vmul.f32 %v550_v28, %v329_v30 }
  0x2b   :  { %v554_v35 = vpop.eup %553  ;;  %v305_v36 = vadd.f32 %v548_v17, %v304_v29  ;;  %v316_v37 = vrot.slane %v552_v32, 4  ;;  %v336_v44 = vrot.slane %v332_v31, 4  ;;  %v334_v21 = vmul.f32 %v552_v32, %v330_v38 }
  0x2c   :  { %v556_v40 = vpop.eup %555  ;;  %v282_v41 = vrot.slane %v281_v33, 2  ;;  %v311_v42 = vadd.f32 %v550_v28, %v310_v34  ;;  %v322_v43 = vrot.slane %v554_v35, 4  ;;  %v335_v22 = vmul.f32 %v554_v35, %v331_v39 }
  0x2d   :  { %v558_v45 = vpop.eup %557  ;;  %v286_v46 = vrot.slane %v556_v40, 4  ;;  %v306_v47 = vrot.slane %v305_v36, 2  ;;  %v317_v48 = vadd.f32 %v552_v32, %v316_v37  ;;  %v337_v62 = vadd.f32 %v336_v44, %v332_v31 }
  0x2e   :  { %v560_v50 = vpop.eup %559  ;;  %v283_v51 = vadd.f32 %v282_v41, %v281_v33  ;;  %v292_v52 = vrot.slane %v558_v45, 4  ;;  %v312_v53 = vrot.slane %v311_v42, 2  ;;  %v323_v54 = vadd.f32 %v554_v35, %v322_v43 }
  0x2f   :  { %v287_v55 = vadd.f32 %v556_v40, %v286_v46  ;;  %v298_v56 = vrot.slane %v560_v50, 4  ;;  %v307_v57 = vadd.f32 %v306_v47, %v305_v36  ;;  %v318_v58 = vrot.slane %v317_v48, 2 }
  0x30   :  { %v293_v59 = vadd.f32 %v558_v45, %v292_v52  ;;  %v313_v60 = vadd.f32 %v312_v53, %v311_v42  ;;  %v324_v61 = vrot.slane %v323_v54, 2  ;;  %v284_v23 = vrot.slane %v283_v51, 1 }
  0x31   :  { %v288_v63 = vrot.slane %v287_v55, 2  ;;  %v299_v14 = vadd.f32 %v560_v50, %v298_v56  ;;  %v308_v15 = vrot.slane %v307_v57, 1  ;;  %v319_v16 = vadd.f32 %v318_v58, %v317_v48 }
  0x32   :  { %v294_v18 = vrot.slane %v293_v59, 2  ;;  %v325_v20 = vadd.f32 %v324_v61, %v323_v54  ;;  %v314_v26 = vrot.slane %v313_v60, 1  ;;  %v338_v6 = vrot.slane %v337_v62, 2 }
  0x33   :  { %v289_v24 = vadd.f32 %v288_v63, %v287_v55  ;;  %v300_v25 = vrot.slane %v299_v14, 2  ;;  %v824_v4 = vadd.f32 %v308_v15, %v307_v57  ;;  %v320_v5 = vrot.slane %v319_v16, 1 }
  0x34   :  { %v295_v27 = vadd.f32 %v294_v18, %v293_v59  ;;  %v326_v13 = vrot.slane %v325_v20, 1  ;;  %v342_v17 = vrot.slane %v333_v49, 4  ;;  %v339_v28 = vadd.f32 %v338_v6, %v337_v62 }
  0x35   :  { %v290_v12 = vrot.slane %v289_v24, 1  ;;  %v301_v9 = vadd.f32 %v300_v25, %v299_v14  ;;  %v348_v29 = vrot.slane %v334_v21, 4  ;;  %v826_v30 = vadd.f32 %v284_v23, %v283_v51 }
  0x36   :  { %v296_v19 = vrot.slane %v295_v27, 1  ;;  %v828_v31 = vadd.f32 %v314_v26, %v313_v60  ;;  %v343_v32 = vadd.f32 %v342_v17, %v333_v49  ;;  %v354_v33 = vrot.slane %v335_v22, 4 }
  0x37   :  { %v302_v34 = vrot.slane %v301_v9, 1  ;;  %v830_v35 = vadd.f32 %v320_v5, %v319_v16  ;;  %v349_v36 = vadd.f32 %v348_v29, %v334_v21  ;;  %561 = vrcp.f32 %v824_v4 }
  0x38   :  { %v833_v37 = vadd.f32 %v290_v12, %v289_v24  ;;  %v835_v38 = vadd.f32 %v326_v13, %v325_v20  ;;  %v344_v39 = vrot.slane %v343_v32, 2  ;;  %v355_v40 = vadd.f32 %v354_v33, %v335_v22 }
  0x39   :  { %v837_v41 = vadd.f32 %v296_v19, %v295_v27  ;;  %v340_v42 = vrot.slane %v339_v28, 1  ;;  %v350_v43 = vrot.slane %v349_v36, 2  ;;  %v369_v44 = vand.u32 2147483647, %v824_v4 }
  0x3a   :  { %v345_v45 = vadd.f32 %v344_v39, %v343_v32  ;;  %v356_v46 = vrot.slane %v355_v40, 2  ;;  %v371_v47 = vand.u32 2147483648, %v824_v4  ;;  %563 = vrcp.f32 %v828_v31 }
  0x3b   :  { %v842_v48 = vadd.f32 %v302_v34, %v301_v9  ;;  %v351_v49 = vadd.f32 %v350_v43, %v349_v36  ;;  %vm365_vm0 = vweird.f32 %v824_v4  ;;  %v383_v50 = vand.u32 2147483647, %v828_v31 }
  0x3c   :  { %v346_v51 = vrot.slane %v345_v45, 1  ;;  %v357_v52 = vadd.f32 %v356_v46, %v355_v40  ;;  %v385_v53 = vand.u32 2147483648, %v828_v31  ;;  %565 = vrcp.f32 %v830_v35 }
  0x3d   :  { %v562_v54 = vpop.eup %561  ;;  %v848_v55 = vadd.f32 %v340_v42, %v339_v28  ;;  %v352_v56 = vrot.slane %v351_v49, 1  ;;  %vm379_vm1 = vweird.f32 %v828_v31  ;;  %v397_v57 = vand.u32 2147483647, %v830_v35 }
  0x3e   :  { %v358_v58 = vrot.slane %v357_v52, 1  ;;  %v361_v59 = vmul.f32 %v562_v54, %v824_v4  ;;  %vm853_vm2 = vcmp.eq.f32.partialorder %v369_v44, 8.507059e+37  ;;  %v372_v61 = vor.u32 1.1754944e-38, %v371_v47 }
  0x3f   :  { %v857_v62 = vadd.f32 %v346_v51, %v345_v45  ;;  %vm366_vm3 = vweird.f32 %v562_v54  ;;  %vm859_vm4 = vcmp.eq.f32.partialorder %v383_v50, 8.507059e+37  ;;  %vm393_vm5 = vweird.f32 %v830_v35 }
  0x40   :  { %v399_v14 = vand.u32 2147483648, %v830_v35  ;;  %v564_v15 = vpop.eup %563  ;;  %v865_v16 = vadd.f32 %v352_v56, %v351_v49  ;;  %v362_v18 = vsub.f32 1.0, %v361_v59  ;;  %v386_v20 = vor.u32 1.1754944e-38, %v385_v53  ;;  %vm882_vm8 = vmor %vm365_vm0, %vm366_vm3 }
  0x41   :  { %567 = vrcp.f32 %v835_v38  ;;  %v868_v21 = vadd.f32 %v358_v58, %v357_v52  ;;  %v375_v22 = vmul.f32 %v564_v15, %v828_v31  ;;  %vm871_vm6 = vcmp.eq.f32.partialorder %v397_v57, 8.507059e+37 }
  0x42   :  { %v411_v24 = vand.u32 2147483647, %v835_v38  ;;  %v566_v25 = vpop.eup %565  ;;  %v363_v26 = vmul.f32 %v562_v54, %v362_v18  ;;  %vm407_vm7 = vweird.f32 %v835_v38  ;;  %v413_v27 = vand.u32 2147483648, %v835_v38 }
  0x43   :  { %569 = vlog2.f32 %v824_v4  ;;  %v376_v6 = vsub.f32 1.0, %v375_v22  ;;  %vm380_vm9 = vweird.f32 %v564_v15  ;;  %v389_v12 = vmul.f32 %v566_v25, %v830_v35 }
  0x44   :  { %v400_v9 = vor.u32 1.1754944e-38, %v399_v14  ;;  %v364_v13 = vadd.f32 %v562_v54, %v363_v26  ;;  %vm394_vm10 = vweird.f32 %v566_v25  ;;  %571 = vlog2.f32 %v828_v31  ;;  %vm899_vm12 = vmor %vm379_vm1, %vm380_vm9 }
  0x45   :  { %v98_v17 = vmul.f32 %v795_v7, %v795_v7  ;;  %v377_v19 = vmul.f32 %v564_v15, %v376_v6  ;;  %v390_v28 = vsub.f32 1.0, %v389_v12  ;;  %vm890_vm11 = vcmp.eq.f32.partialorder %v411_v24, 8.507059e+37  ;;  %vm914_vm13 = vmor %vm393_vm5, %vm394_vm10 }
  0x46   :  { %573 = vlog2.f32 %v830_v35  ;;  %v368_v32 = vsel %vm882_vm8, %v562_v54, %v364_v13  ;;  %v414_v34 = vor.u32 1.1754944e-38, %v413_v27  ;;  %v99_v7 = vmul.f32 %v797_v8, %v797_v8 }
  0x47   :  { %v568_v29 = vpop.eup %567  ;;  %575 = vlog2.f32 %v835_v38  ;;  %v378_v36 = vadd.f32 %v564_v15, %v377_v19  ;;  %v391_v39 = vmul.f32 %v566_v25, %v390_v28  ;;  %v100_v42 = vmul.f32 %v800_v10, %v800_v10 }
  0x48   :  { %v403_v40 = vmul.f32 %v568_v29, %v835_v38  ;;  %v373_v31 = vsel %vm853_vm2, %v372_v61, %v368_v32  ;;  %577 = vlog2.f32 %v826_v30  ;;  %v101_v8 = vmul.f32 %v802_v11, %v802_v11 }
  0x49   :  { %v570_v43 = vpop.eup %569  ;;  %v102_v45 = vrot.slane %v98_v17, 4  ;;  %v382_v10 = vsel %vm899_vm12, %v564_v15, %v378_v36  ;;  %v392_v46 = vadd.f32 %v566_v25, %v391_v39  ;;  %vm408_vm14 = vweird.f32 %v568_v29 }
  0x4a   :  { %v404_v47 = vsub.f32 1.0, %v403_v40  ;;  %v572_v49 = vpop.eup %571  ;;  %v387_v35 = vsel %vm859_vm4, %v386_v20, %v382_v10  ;;  %579 = vlog2.f32 %v833_v37  ;;  %v108_v51 = vrot.slane %v99_v7, 4  ;;  %vm933_vm15 = vmor %vm407_vm7, %vm408_vm14 }
  0x4b   :  { %v103_v50 = vadd.f32 %v102_v45, %v98_v17  ;;  %v396_v30 = vsel %vm914_vm13, %v566_v25, %v392_v46  ;;  %v416_v53 = vmul.f32 %v373_v31, %v848_v55  ;;  %v421_v54 = vmul.f32 0.6931472, %v570_v43 }
  0x4c   :  { %v574_v52 = vpop.eup %573  ;;  %v405_v11 = vmul.f32 %v568_v29, %v404_v47  ;;  %v401_v57 = vsel %vm871_vm6, %v400_v9, %v396_v30  ;;  %v417_v37 = vmul.f32 %v387_v35, %v857_v62  ;;  %581 = vlog2.f32 %v837_v41 }
  0x4d   :  { %v576_v56 = vpop.eup %575  ;;  %vm449_vm0 = vcmask 1040384   ;;  %v104_v59 = vrot.slane %v103_v50, 2  ;;  %v423_v61 = vmul.f32 0.6931472, %v572_v49  ;;  %v425_v55 = vmul.f32 0.6931472, %v574_v52 }
  0x4e   :  { %v406_v60 = vadd.f32 %v568_v29, %v405_v11  ;;  %583 = vlog2.f32 %v842_v48  ;;  %v578_v63 = vpop.eup %577  ;;  %v109_v15 = vadd.f32 %v108_v51, %v99_v7  ;;  %v114_v18 = vrot.slane %v100_v42, 4 }
  0x4f   :  { %v105_v14 = vadd.f32 %v104_v59, %v103_v50  ;;  %v120_v38 = vrot.slane %v101_v8, 4  ;;  %v418_v22 = vmul.f32 %v401_v57, %v865_v16  ;;  %v427_v62 = vmul.f32 0.6931472, %v576_v56 }
  0x50   :  { %v410_v20 = vsel %vm933_vm15, %v568_v29, %v406_v60  ;;  %v429_v23 = vmul.f32 0.6931472, %v578_v63  ;;  %v580_v41 = vpop.eup %579  ;;  %v110_v26 = vrot.slane %v109_v15, 2  ;;  %v115_v27 = vadd.f32 %v114_v18, %v100_v42 }
  0x51   :  { %v415_v24 = vsel %vm890_vm11, %v414_v34, %v410_v20  ;;  %v106_v25 = vrot.slane %v105_v14, 1  ;;  %v431_v5 = vmul.f32 0.6931472, %v580_v41  ;;  %v121_v12 = vadd.f32 %v120_v38, %v101_v8 }
  0x52   :  { %v419_v48 = vmul.f32 %v415_v24, %v868_v21  ;;  %v436_v6 = vsub.f32 %v421_v54, %v429_v23  ;;  %v582_v9 = vpop.eup %581  ;;  %v111_v17 = vadd.f32 %v110_v26, %v109_v15  ;;  %v116_v19 = vrot.slane %v115_v27, 2 }
  0x53   :  { %v107_v13 = vadd.f32 %v106_v25, %v105_v14  ;;  %v62_v16 = vmul.f32 %v784_v0, %v784_v0  ;;  %v433_v29 = vmul.f32 0.6931472, %v582_v9  ;;  %v437_v32 = vsub.f32 %v423_v61, %v431_v5 }
  0x54   :  { %v584_v28 = vpop.eup %583  ;;  %v440_v4 = vadd.f32 1e-07, %v436_v6  ;;  %v122_v33 = vrot.slane %v121_v12, 2  ;;  %vm139_vm1 = vcmask 1041409   ;;  %v112_v7 = vrot.slane %v111_v17, 1 }
  0x55   :  { %v435_v34 = vmul.f32 0.6931472, %v584_v28  ;;  %v117_v36 = vadd.f32 %v116_v19, %v115_v27  ;;  %v948_v21 = vmul.f32 0.125, %v107_v13  ;;  %vm144_vm2 = vcmask 1041408  }
  0x56   :  { %v438_v39 = vsub.f32 %v425_v55, %v433_v29  ;;  %v441_v40 = vadd.f32 1e-07, %v437_v32  ;;  %v444_v42 = vsub.f32 %v416_v53, %v440_v4  ;;  %v123_v43 = vadd.f32 %v122_v33, %v121_v12 }
  0x57   :  { %v439_v31 = vsub.f32 %v427_v62, %v435_v34  ;;  %v113_v44 = vadd.f32 %v112_v7, %v111_v17  ;;  %v118_v8 = vrot.slane %v117_v36, 1  ;;  %v153_v0 = vmul.f32 %v948_v21, %v948_v21 }
  0x58   :  { %v442_v45 = vadd.f32 1e-07, %v438_v39  ;;  %v445_v10 = vsub.f32 %v417_v37, %v441_v40  ;;  %v450_v46 = vsel %vm449_vm0, %v444_v42, 0.0  ;;  %v124_v47 = vrot.slane %v123_v43, 1 }
  0x59   :  { %v443_v49 = vadd.f32 1e-07, %v439_v31  ;;  %v119_v35 = vadd.f32 %v118_v8, %v117_v36  ;;  %v127_v50 = vmul.f32 0.125, %v113_v44  ;;  %v63_v51 = vmul.f32 %v786_v1, %v786_v1 }
  0x5a   :  { %v446_v52 = vsub.f32 %v418_v22, %v442_v45  ;;  %v451_v30 = vsel %vm449_vm0, %v445_v10, 0.0  ;;  %v125_v11 = vadd.f32 %v124_v47, %v123_v43  ;;  %v64_v53 = vmul.f32 %v788_v2, %v788_v2 }
  0x5b   :  { %v447_v54 = vsub.f32 %v419_v48, %v443_v49  ;;  %v452_v56 = vadd.f32 %v451_v30, %v450_v46  ;;  %v128_v57 = vmul.f32 0.125, %v119_v35  ;;  %v154_v58 = vmul.f32 %v127_v50, %v127_v50 }
  0x5c   :  { %v453_v37 = vsel %vm449_vm0, %v446_v52, 0.0  ;;  %v129_v59 = vmul.f32 0.125, %v125_v11  ;;  %v65_v60 = vmul.f32 %v790_v3, %v790_v3  ;;  %v66_v61 = vrot.slane %v62_v16, 4 }
  0x5d   :  { %v454_v55 = vadd.f32 %v453_v37, %v452_v56  ;;  %v455_v1 = vsel %vm449_vm0, %v447_v54, 0.0  ;;  %v155_v63 = vmul.f32 %v128_v57, %v128_v57  ;;  %v72_v14 = vrot.slane %v63_v51, 4 }
  0x5e   :  { %v156_v15 = vmul.f32 %v129_v59, %v129_v59  ;;  %v67_v18 = vadd.f32 %v66_v61, %v62_v16  ;;  %v78_v38 = vrot.slane %v64_v53, 4  ;;  %v84_v2 = vrot.slane %v65_v60, 4 }
  0x5f   :  { %v456_v20 = vadd.f32 %v455_v1, %v454_v55  ;;  %v161_v22 = vsel %vm139_vm1, %v155_v63, %v153_v0  ;;  %v73_v62 = vadd.f32 %v72_v14, %v63_v51 }
  0x60   :  { %v162_v23 = vsel %vm139_vm1, %v156_v15, %v154_v58  ;;  %v165_v41 = vsel %vm144_vm2, %v161_v22, 0.0  ;;  %v68_v24 = vrot.slane %v67_v18, 2  ;;  %v79_v3 = vadd.f32 %v78_v38, %v64_v53 }
  0x61   :  { %457 = vadd.xlane.f32.xlu0 %v456_v20  ;;  %v166_v25 = vsel %vm144_vm2, %v162_v23, 0.0  ;;  %v74_v26 = vrot.slane %v73_v62, 2  ;;  %v85_v27 = vadd.f32 %v84_v2, %v65_v60  ;;  %v743_v53 = vmov 0.0  }
  0x62   :  { %v167_v48 = vadd.f32 %v166_v25, %v165_v41  ;;  %v69_v5 = vadd.f32 %v68_v24, %v67_v18  ;;  %v80_v6 = vrot.slane %v79_v3, 2  ;;  %56 = vst [vmem:[#allocation10] sm:$0x3] %v743_v53 }
  0x63   :  { %v75_v12 = vadd.f32 %v74_v26, %v73_v62  ;;  %v86_v9 = vrot.slane %v85_v27, 2  ;;  %55 = vst [vmem:[#allocation8] sm:$0x3] %v743_v53 }
  0x64   :  { %168 = vadd.xlane.f32.xlu1 %v167_v48  ;;  %v70_v13 = vrot.slane %v69_v5, 1  ;;  %v81_v17 = vadd.f32 %v80_v6, %v79_v3  ;;  %57 = vst [vmem:[#allocation11] sm:$0x3] %v743_v53 }
  0x65   :  { %v76_v19 = vrot.slane %v75_v12, 1  ;;  %v87_v16 = vadd.f32 %v86_v9, %v85_v27 }
  0x66   :  { %v71_v28 = vadd.f32 %v70_v13, %v69_v5  ;;  %v82_v29 = vrot.slane %v81_v17, 1 }
  0x67   :  { %v77_v32 = vadd.f32 %v76_v19, %v75_v12  ;;  %v88_v4 = vrot.slane %v87_v16, 1 }
  0x68   :  { %v83_v33 = vadd.f32 %v82_v29, %v81_v17  ;;  %v90_v34 = vmul.f32 0.125, %v71_v28 }
  0x69   :  { %v89_v7 = vadd.f32 %v88_v4, %v87_v16  ;;  %v91_v36 = vmul.f32 0.125, %v77_v32 }
  0x6a   :  { %v92_v39 = vmul.f32 0.125, %v83_v33  ;;  %v131_v40 = vmul.f32 %v90_v34, %v90_v34  ;;  %v173_v42 = vmul.f32 %v948_v21, %v90_v34  ;;  %v130_v14 = vld [vmem:[#allocation8] sm:$0x3] }
  0x6b   :  { %v93_v43 = vmul.f32 0.125, %v89_v7  ;;  %v132_v31 = vmul.f32 %v91_v36, %v91_v36  ;;  %v174_v44 = vmul.f32 %v127_v50, %v91_v36  ;;  %v172_v38 = vld [vmem:[#allocation11] sm:$0x3] }
  0x6c   :  { %v133_v8 = vmul.f32 %v92_v39, %v92_v39  ;;  %v175_v0 = vmul.f32 %v128_v57, %v92_v39  ;;  %v152_v57 = vld [vmem:[#allocation10] sm:$0x3] }
  0x6d   :  { %v134_v45 = vmul.f32 %v93_v43, %v93_v43  ;;  %v176_v10 = vmul.f32 %v129_v59, %v93_v43 }
  0x6e   :  { %v140_v46 = vsel %vm139_vm1, %v133_v8, %v131_v40  ;;  %v181_v47 = vsel %vm139_vm1, %v175_v0, %v173_v42 }
  0x6f   :  { %v141_v49 = vsel %vm139_vm1, %v134_v45, %v132_v31  ;;  %v145_v35 = vsel %vm144_vm2, %v140_v46, 0.0  ;;  %v182_v51 = vsel %vm139_vm1, %v176_v10, %v174_v44  ;;  %v185_v52 = vsel %vm144_vm2, %v181_v47, 0.0 }
  0x70   :  { %v146_v21 = vsel %vm144_vm2, %v141_v49, 0.0  ;;  %v186_v50 = vsel %vm144_vm2, %v182_v51, 0.0 }
  0x71   :  { %v147_v30 = vadd.f32 %v146_v21, %v145_v35  ;;  %v187_v11 = vadd.f32 %v186_v50, %v185_v52 }
  0x73   :  { %148 = vadd.xlane.f32.xlu0 %v147_v30  ;;  %188 = vadd.xlane.f32.xlu1 %v187_v11 }
  0xd4   :  { %v458_v54 = vpop.xlane.xlu0 %457 }
  0xd5   :  { %v459_v56 = vrot.slane %v458_v54, 4 }
  0xd7   :  { %v460_v58 = vadd.f32 %v459_v56, %v458_v54  ;;  %v169_v37 = vpop.xlane.xlu1 %168 }
  0xd8   :  { %v170_v59 = vadd.f32 %v169_v37, %v152_v57 }
  0xd9   :  { %v461_v60 = vrot.slane %v460_v58, 2 }
  0xda   :  { %171 = vst [vmem:[#allocation10] sm:$0x3] %v170_v59 }
  0xdb   :  { %v462_v61 = vadd.f32 %v461_v60, %v460_v58 }
  0xdd   :  { %v463_v55 = vrot.slane %v462_v61, 1 }
  0xdf   :  { %v464_v1 = vadd.f32 %v463_v55, %v462_v61 }
  0xe1   :  { %534 = vpush %v464_v1 }
  0xe6   :  { %v149_v63 = vpop.xlane.xlu0 %148  ;;  %v189_v18 = vpop.xlane.xlu1 %188 }
  0xe7   :  { %v150_v15 = vadd.f32 %v149_v63, %v130_v14  ;;  %v190_v2 = vadd.f32 %v189_v18, %v172_v38 }
  0xe9   :  { %151 = vst [vmem:[#allocation8] sm:$0x3] %v150_v15 }
  0xea   :  { %191 = vst [vmem:[#allocation11] sm:$0x3] %v190_v2  ;;  %490 = dma.vmem_to_hbm [thread:$0]  %s486_s1, 32, %s488_s7, [#allocation9]  }
  0xeb   :  { %501 = dma.vmem_to_hbm [thread:$0]  %s497_s9, 32, %s499_s12, [#allocation9]  }
  0xec   :  { %512 = dma.vmem_to_hbm [thread:$0]  %s508_s14, 32, %s510_s17, [#allocation12]  }
 0x112   :  { %s535_s20 = spop %534 }
 0x113   :  { %v466_v20 = vstv %s535_s20 }
 0x114   :  { %468 = vst [vmem:[#allocation7] sm:$0xff] %v466_v20 }
 0x115   :  { %479 = dma.vmem_to_hbm [thread:$0]  %s475_s4, 128, %s477_s5, [#allocation4]  }
 0x116   :  { %733 = dma.done.wait [#allocation4], 128  }
 0x117   :  { %734 = vsyncadd [#allocation4], 4294967168 }
 0x118   :  { %735 = dma.done.wait [#allocation9], 64  }
 0x119   :  { %736 = vsyncadd [#allocation9], 4294967232 }
 0x11a   :  { %737 = dma.done.wait [#allocation12], 32  }
 0x11b   :  { %738 = vsyncadd [#allocation12], 4294967264 }
 0x11c   :  { %529 = vsyncpa [#allocation3], 1 }
 0x11d   :  { %530 = vsyncpa [#allocation6], 1 }
 0x11e   :  { %531 = vsyncpa [#allocation4], 1 }
 0x11f   :  { %532 = vsyncpa [#allocation9], 1 }
 0x120   :  { %533 = vsyncpa [#allocation12], 1 }

</bundles_post_ra>
